<compile_context>
chip_gen: v7x
topology: tpu7x:2x2x1
jax: 0.10.0
libtpu: 0.0.40
codegen_flags: <defaults>
</compile_context>

<pallas_src>
import math

import numpy as np
import jax
import jax.numpy as jnp
from jax import lax
from jax.experimental import pallas as pl
from jax.experimental.pallas import tpu as pltpu


def _translator_kernel(x_ref, w_ref, b_ref, basis_ref, sel_ref, cvec_ref,
                       out_ref, map_ref):
    # x_ref:     (TB, E, K, cin)   contiguous batch-tile of x (E-major layout)
    # w_ref:     (cin, cout)       Linear weight, already (cin, cout)
    # b_ref:     (1, cout)         Linear bias
    # basis_ref: (E, K, cout)      caps_basis, E-major layout
    # sel_ref:   (cout, cout)      builds cat((oh[:, :d], oh[:, :d], 0, 0))
    # cvec_ref:  (1, cout)         1/num_caps on the "light" columns
    # out_ref:   (TB, K, cout)     final output (sum over E), written this step
    # map_ref:   (TB, E, K, cout)  caps_attn_map, E-major layout
    TB, E, K, cin = x_ref.shape
    cout = out_ref.shape[-1]

    w = w_ref[...]
    bias = b_ref[...]
    sel = sel_ref[...]
    cvec = cvec_ref[...]

    # E is a small compile-time constant (typically 1-2): a static Python loop
    # unrolls cleanly and keeps every Ref index static.
    for e in range(E):
        # Linear(cin -> cout): merge (TB, K) into the sublane axis so the whole
        # slab is a single MXU matmul (K is a multiple of 8 -> free reshape).
        xe = x_ref[:, e, :, :]                                   # (TB, K, cin)
        feat = jnp.dot(xe.reshape(TB * K, cin), w,
                       preferred_element_type=jnp.float32)
        feat = (feat + bias).reshape(TB, K, cout)

        amap = feat * basis_ref[e]                   # (K, cout) bcast over TB
        map_ref[:, e, :, :] = amap                   # contiguous HBM writeback

        # softmax over the capsule axis (torch dim=1 -> axis 1 here)
        m = jnp.max(amap, axis=1, keepdims=True)                 # (TB, 1, cout)
        ex = jnp.exp(amap - m)
        denom = jnp.sum(ex, axis=1, keepdims=True)
        attn = ex * pl.reciprocal(denom, approx=False)

        # First-occurrence argmax over the capsule axis, taken from the
        # PRE-softmax map (softmax is monotone per column, identical argmax);
        # the XLU min/compare overlaps the EUP exp/reciprocal above.
        caps_iota = lax.broadcasted_iota(jnp.int32, (TB, K, cout), 1)
        cand = jnp.where(amap == m, caps_iota, K)
        first = jnp.min(cand, axis=1, keepdims=True)
        onehot = (caps_iota == first).astype(jnp.float32)

        # attn_tmp = cat((oh[:, :d], oh[:, :d], 1/num_caps, 1/num_caps), -1)
        # built as a constant-selection matmul (MXU is idle here) + const vec.
        attn_tmp = jnp.dot(onehot.reshape(TB * K, cout), sel,
                           preferred_element_type=jnp.float32)
        attn_tmp = attn_tmp.reshape(TB, K, cout) + cvec

        contrib = attn * feat * attn_tmp            # one each_caps term
        if e == 0:
            out_ref[...] = contrib
        else:
            out_ref[...] += contrib


def _pick_batch_tile(B, K, E, *, budget_bytes=16 << 20, cap=256):
    """Largest sublane-aligned batch tile whose (lane-padded, double-buffered)
    blocks plus an allowance for the compiler's large vector temporaries fit a
    budget that is safe on every TPU generation when paired with the explicit
    vmem_limit_bytes=32 MiB below (v5e 128 MiB phys / 16 MiB default scoped,
    v6e 128/32, v7x 64/32).  TB is capped so the batch grid axis keeps >= 2
    steps (both v7x TensorCores get work)."""
    cdiv = lambda a, d: -(-a // d)
    row = K * 128 * 4                               # one lane-padded (K, *) f32 slab
    per_tb = (2 * 2 * E + 2 + 8) * row              # x+map dbl-buf, out dbl-buf, temps
    tb = max(1, min(cap, budget_bytes // per_tb))
    if B >= 2:
        tb = min(tb, cdiv(B, 2))                    # >= 2 batch grid steps
    if tb >= 8:
        tb = (tb // 8) * 8                          # sublane-align
        steps = cdiv(B, tb)
        tb = min(tb, max(8, cdiv(cdiv(B, steps), 8) * 8))   # minimize padding
    return max(1, tb)


def translator_nn_caps(feat_list, w, b, caps_basis, *, num_caps, num_each_caps,
                       layer=-2, depth_dim=8, light_dim=4, batch_tile=None):
    x = feat_list[layer]
    B, N = x.shape[0], x.shape[1]
    K = N * N
    assert K == num_caps, "num_caps must equal N*N for the basis broadcast"
    E = num_each_caps

    # torch: x.reshape(B, N*N, num_each_caps, -1) -- pure reshape.
    x = jnp.asarray(x, jnp.float32).reshape(B, K, E, -1)
    cin = x.shape[-1]
    # NOTE: w is expected as (cin, cout), i.e. nn.Linear.weight transposed.
    assert w.shape[0] == cin, "w must have shape (cin, cout) (= Linear.weight.T)"
    cout = w.shape[1]
    assert cout == 2 * depth_dim + 2 * light_dim

    basis = jnp.asarray(caps_basis, jnp.float32)[0]          # (K, E, cout)
    assert basis.shape == (K, E, cout)

    # Wrapper-side contiguity relayouts (one XLA pass each): putting E next to
    # the batch axis makes every per-step DMA fully contiguous in HBM and lets
    # the kernel slice E on a major (untiled) dim.
    xT = jnp.transpose(x, (0, 2, 1, 3))                      # (B, E, K, cin)
    basisT = jnp.transpose(basis, (1, 0, 2))                 # (E, K, cout)

    w32 = jnp.asarray(w, jnp.float32)
    b2 = jnp.asarray(b, jnp.float32).reshape(1, cout)

    # Constant selection matrix S and constant vector cvec:
    #   (onehot @ S)[:, j] = onehot[:, j]            for j <  depth_dim
    #                      = onehot[:, j-depth_dim]  for depth_dim <= j < 2d
    #                      = 0                       otherwise
    #   cvec[j] = 1/num_caps for j >= 2*depth_dim else 0
    sel = np.zeros((cout, cout), np.float32)
    for i in range(depth_dim):
        sel[i, i] = 1.0
        sel[i, i + depth_dim] = 1.0
    cvec = np.zeros((1, cout), np.float32)
    cvec[0, 2 * depth_dim:] = 1.0 / num_caps
    sel = jnp.asarray(sel)
    cvec = jnp.asarray(cvec)

    TB = batch_tile if batch_tile is not None else _pick_batch_tile(B, K, E)
    steps = -(-B // TB)
    Bp = steps * TB
    if Bp != B:                                   # relax "TB divides B"
        xT = jnp.pad(xT, ((0, Bp - B), (0, 0), (0, 0), (0, 0)))

    out, mapT = pl.pallas_call(
        _translator_kernel,
        out_shape=(
            jax.ShapeDtypeStruct((Bp, K, cout), jnp.float32),
            jax.ShapeDtypeStruct((Bp, E, K, cout), jnp.float32),
        ),
        grid=(steps,),
        in_specs=[
            pl.BlockSpec((TB, E, K, cin), lambda bi: (bi, 0, 0, 0)),
            pl.BlockSpec((cin, cout), lambda bi: (0, 0)),
            pl.BlockSpec((1, cout), lambda bi: (0, 0)),
            pl.BlockSpec((E, K, cout), lambda bi: (0, 0, 0)),
            pl.BlockSpec((cout, cout), lambda bi: (0, 0)),
            pl.BlockSpec((1, cout), lambda bi: (0, 0)),
        ],
        out_specs=(
            pl.BlockSpec((TB, K, cout), lambda bi: (bi, 0, 0)),
            pl.BlockSpec((TB, E, K, cout), lambda bi: (bi, 0, 0, 0)),
        ),
        compiler_params=pltpu.CompilerParams(
            dimension_semantics=("parallel",),
            vmem_limit_bytes=32 << 20),
    )(xT, w32, b2, basisT, sel, cvec)

    out = out[:B]
    mapT = mapT[:B]
    if E == 1:                                    # torch squeeze(dim=2)
        caps_attn_map = mapT[:, 0]                # (B, K, cout)
    else:
        caps_attn_map = jnp.transpose(mapT, (0, 2, 1, 3))    # (B, K, E, cout)
    return out, caps_attn_map


def translator_nn_caps_ref(feat_list, w, b, caps_basis, *, num_caps,
                           num_each_caps, layer=-2, depth_dim=8, light_dim=4):
    """Pure-JAX reference mirroring the PyTorch forward."""
    x = feat_list[layer]
    B, N = x.shape[0], x.shape[1]
    x = x.reshape(B, N * N, num_each_caps, -1)
    caps_feat = x @ w + b                                    # nn.Linear
    caps_attn_map = caps_feat * caps_basis
    caps_attn_final = jax.nn.softmax(caps_attn_map, axis=1)
    ind = jnp.argmax(caps_attn_final, axis=1)                # (B, E, cout)
    attn_onehot = jax.nn.one_hot(ind, num_caps, axis=1,
                                 dtype=caps_attn_final.dtype)
    tmp1 = attn_onehot[:, :, :, :depth_dim]
    tmp2 = (attn_onehot[:, :, :, 2 * depth_dim:2 * depth_dim + light_dim] * 0.0
            + 1.0 / num_caps)
    attn_tmp = jnp.concatenate((tmp1, tmp1, tmp2, tmp2), axis=-1)
    output = (caps_attn_final * caps_feat * attn_tmp).sum(axis=2)
    attn_out = (jnp.squeeze(caps_attn_map, axis=2) if num_each_caps == 1
                else caps_attn_map)
    return output, attn_out


def _run_case(key, B, N, num_each_caps, cin, depth_dim, light_dim):
    num_caps = N * N
    cout = 2 * depth_dim + 2 * light_dim
    k0, k1, k2 = jax.random.split(key, 3)

    # nn.Linear(cin, cout): weight ~ N(0, 0.01), bias = 0 (per module __init__)
    w = jax.random.normal(k0, (cin, cout), jnp.float32) * 0.01
    b = jnp.zeros((cout,), jnp.float32)

    # caps_basis: kaiming_normal_ on shape (1, num_caps, num_each_caps, cout)
    fan_in = num_caps * num_each_caps * cout
    std = math.sqrt(2.0 / fan_in)
    caps_basis = jax.random.normal(
        k1, (1, num_caps, num_each_caps, cout), jnp.float32) * std

    x5 = jax.random.normal(k2, (B, N, N, num_each_caps, cin), jnp.float32)
    feat_list = [x5, jnp.zeros((1,), jnp.float32)]   # layer=-2 -> x5

    out, attn_map = translator_nn_caps(
        feat_list, w, b, caps_basis,
        num_caps=num_caps, num_each_caps=num_each_caps,
        depth_dim=depth_dim, light_dim=light_dim)
    jax.block_until_ready((out, attn_map))

    out_ref, attn_map_ref = translator_nn_caps_ref(
        feat_list, w, b, caps_basis,
        num_caps=num_caps, num_each_caps=num_each_caps,
        depth_dim=depth_dim, light_dim=light_dim)

    np.testing.assert_allclose(np.asarray(out), np.asarray(out_ref),
                               rtol=1e-5, atol=1e-5)
    np.testing.assert_allclose(np.asarray(attn_map), np.asarray(attn_map_ref),
                               rtol=1e-5, atol=1e-5)


if __name__ == "__main__":
    root = jax.random.PRNGKey(0)
    k_a, k_b = jax.random.split(root)
    # Case 1: E=2, small batch (matches 5-D feature map (B, N, N, E, cin)).
    _run_case(k_a, B=2, N=4, num_each_caps=2, cin=32, depth_dim=8, light_dim=4)
    # Case 2: E=1 (squeeze path) with a batch that is not divisible by the
    # chosen tile (exercises the padding path).
    _run_case(k_b, B=3, N=4, num_each_caps=1, cin=32, depth_dim=8, light_dim=4)
    print("KERNEL_OK")
</pallas_src>

<mosaic_0001>
module attributes {stable_mosaic.version = 11 : i64} {
  func.func @_translator_kernel(%arg0: i32, %arg1: memref<1x2x16x32xf32, #tpu.memory_space<vmem>>, %arg2: memref<32x24xf32, #tpu.memory_space<vmem>>, %arg3: memref<1x24xf32, #tpu.memory_space<vmem>>, %arg4: memref<2x16x24xf32, #tpu.memory_space<vmem>>, %arg5: memref<24x24xf32, #tpu.memory_space<vmem>>, %arg6: memref<1x24xf32, #tpu.memory_space<vmem>>, %arg7: memref<1x16x24xf32, #tpu.memory_space<vmem>>, %arg8: memref<1x2x16x24xf32, #tpu.memory_space<vmem>>) attributes {dimension_semantics = [#tpu.dimension_semantics<parallel>], iteration_bounds = array<i64: 2>, scalar_prefetch = 0 : i64, scratch_operands = 0 : i64, tpu.core_type = #tpu.core_type<tc>, window_params = [{transform_indices = @transform_0, window_bounds = array<i64: 1, 2, 16, 32>}, {pipeline_mode = #tpu.pipeline_mode<synchronous>, transform_indices = @transform_1, window_bounds = array<i64: 32, 24>}, {pipeline_mode = #tpu.pipeline_mode<synchronous>, transform_indices = @transform_2, window_bounds = array<i64: 1, 24>}, {pipeline_mode = #tpu.pipeline_mode<synchronous>, transform_indices = @transform_3, window_bounds = array<i64: 2, 16, 24>}, {pipeline_mode = #tpu.pipeline_mode<synchronous>, transform_indices = @transform_4, window_bounds = array<i64: 24, 24>}, {pipeline_mode = #tpu.pipeline_mode<synchronous>, transform_indices = @transform_5, window_bounds = array<i64: 1, 24>}, {transform_indices = @transform_6, window_bounds = array<i64: 1, 16, 24>}, {transform_indices = @transform_7, window_bounds = array<i64: 1, 2, 16, 24>}]} {
    %c0 = arith.constant 0 : index
    %c0_0 = arith.constant 0 : index
    %0 = vector.load %arg2[%c0, %c0_0] : memref<32x24xf32, #tpu.memory_space<vmem>>, vector<32x24xf32>
    %c0_1 = arith.constant 0 : index
    %c0_2 = arith.constant 0 : index
    %1 = vector.load %arg3[%c0_1, %c0_2] : memref<1x24xf32, #tpu.memory_space<vmem>>, vector<1x24xf32>
    %c0_3 = arith.constant 0 : index
    %c0_4 = arith.constant 0 : index
    %2 = vector.load %arg5[%c0_3, %c0_4] : memref<24x24xf32, #tpu.memory_space<vmem>>, vector<24x24xf32>
    %c0_5 = arith.constant 0 : index
    %c0_6 = arith.constant 0 : index
    %3 = vector.load %arg6[%c0_5, %c0_6] : memref<1x24xf32, #tpu.memory_space<vmem>>, vector<1x24xf32>
    %c0_7 = arith.constant 0 : index
    %c0_8 = arith.constant 0 : index
    %c0_9 = arith.constant 0 : index
    %c0_10 = arith.constant 0 : index
    %4 = vector.load %arg1[%c0_7, %c0_8, %c0_9, %c0_10] : memref<1x2x16x32xf32, #tpu.memory_space<vmem>>, vector<1x1x16x32xf32>
    %5 = vector.shape_cast %4 : vector<1x1x16x32xf32> to vector<1x16x32xf32>
    %6 = vector.shape_cast %5 : vector<1x16x32xf32> to vector<16x32xf32>
    %cst = arith.constant dense<0.000000e+00> : vector<16x24xf32>
    %7 = tpu.matmul %6, %0, %cst {dimension_numbers = #tpu.dot_dimension_numbers<[1], [0], [0], [1], [0, 0, 1, 1], [], []>} : vector<16x32xf32>, vector<32x24xf32>, vector<16x24xf32> -> vector<16x24xf32>
    %8 = vector.broadcast %1 : vector<1x24xf32> to vector<16x24xf32>
    %9 = arith.addf %7, %8 : vector<16x24xf32>
    %10 = vector.shape_cast %9 : vector<16x24xf32> to vector<1x16x24xf32>
    %c0_11 = arith.constant 0 : index
    %c0_12 = arith.constant 0 : index
    %c0_13 = arith.constant 0 : index
    %11 = vector.load %arg4[%c0_11, %c0_12, %c0_13] : memref<2x16x24xf32, #tpu.memory_space<vmem>>, vector<1x16x24xf32>
    %12 = vector.shape_cast %11 : vector<1x16x24xf32> to vector<16x24xf32>
    %13 = vector.shape_cast %12 : vector<16x24xf32> to vector<1x16x24xf32>
    %14 = arith.mulf %10, %13 : vector<1x16x24xf32>
    %c0_14 = arith.constant 0 : index
    %c0_15 = arith.constant 0 : index
    %c0_16 = arith.constant 0 : index
    %c0_17 = arith.constant 0 : index
    %15 = vector.load %arg8[%c0_14, %c0_15, %c0_16, %c0_17] : memref<1x2x16x24xf32, #tpu.memory_space<vmem>>, vector<1x1x16x24xf32>
    %16 = vector.shape_cast %15 : vector<1x1x16x24xf32> to vector<1x16x24xf32>
    %17 = vector.shape_cast %14 : vector<1x16x24xf32> to vector<1x1x16x24xf32>
    tpu.vector_store %arg8[%c0_14, %c0_15, %c0_16, %c0_17], %17 {strides = array<i32>} : memref<1x2x16x24xf32, #tpu.memory_space<vmem>>, vector<1x1x16x24xf32>,
    %cst_18 = arith.constant dense<0xFF800000> : vector<1x24xf32>
    %18 = vector.multi_reduction <maximumf>, %14, %cst_18 [1] : vector<1x16x24xf32> to vector<1x24xf32>
    %19 = vector.shape_cast %18 : vector<1x24xf32> to vector<1x1x24xf32>
    %20 = vector.broadcast %19 : vector<1x1x24xf32> to vector<1x16x24xf32>
    %21 = arith.subf %14, %20 : vector<1x16x24xf32>
    %22 = math.exp %21 : vector<1x16x24xf32>
    %cst_19 = arith.constant dense<0.000000e+00> : vector<1x24xf32>
    %23 = vector.multi_reduction <add>, %22, %cst_19 [1] : vector<1x16x24xf32> to vector<1x24xf32>
    %24 = vector.shape_cast %23 : vector<1x24xf32> to vector<1x1x24xf32>
    %25 = tpu.reciprocal %24 : vector<1x1x24xf32> -> vector<1x1x24xf32>
    %26 = vector.broadcast %25 : vector<1x1x24xf32> to vector<1x16x24xf32>
    %27 = arith.mulf %22, %26 : vector<1x16x24xf32>
    %28 = tpu.iota {dimensions = array<i32: 1>} : vector<1x16x24xi32>
    %29 = vector.broadcast %19 : vector<1x1x24xf32> to vector<1x16x24xf32>
    %30 = arith.cmpf oeq, %14, %29 : vector<1x16x24xf32>
    %c16_i32 = arith.constant 16 : i32
    %31 = vector.broadcast %c16_i32 : i32 to vector<1x16x24xi32>
    %32 = arith.select %30, %28, %31 : vector<1x16x24xi1>, vector<1x16x24xi32>
    %cst_20 = arith.constant dense<2147483647> : vector<1x24xi32>
    %33 = vector.multi_reduction <minsi>, %32, %cst_20 [1] : vector<1x16x24xi32> to vector<1x24xi32>
    %34 = vector.shape_cast %33 : vector<1x24xi32> to vector<1x1x24xi32>
    %35 = vector.broadcast %34 : vector<1x1x24xi32> to vector<1x16x24xi32>
    %36 = arith.cmpi eq, %28, %35 : vector<1x16x24xi32>
    %37 = arith.extui %36 : vector<1x16x24xi1> to vector<1x16x24xi32>
    %38 = arith.sitofp %37 : vector<1x16x24xi32> to vector<1x16x24xf32>
    %39 = vector.shape_cast %38 : vector<1x16x24xf32> to vector<16x24xf32>
    %cst_21 = arith.constant dense<0.000000e+00> : vector<16x24xf32>
    %40 = tpu.matmul %39, %2, %cst_21 {dimension_numbers = #tpu.dot_dimension_numbers<[1], [0], [0], [1], [0, 0, 1, 1], [], []>} : vector<16x24xf32>, vector<24x24xf32>, vector<16x24xf32> -> vector<16x24xf32>
    %41 = vector.shape_cast %40 : vector<16x24xf32> to vector<1x16x24xf32>
    %42 = vector.shape_cast %3 : vector<1x24xf32> to vector<1x1x24xf32>
    %43 = vector.broadcast %42 : vector<1x1x24xf32> to vector<1x16x24xf32>
    %44 = arith.addf %41, %43 : vector<1x16x24xf32>
    %45 = arith.mulf %27, %10 : vector<1x16x24xf32>
    %46 = arith.mulf %45, %44 : vector<1x16x24xf32>
    %c0_22 = arith.constant 0 : index
    %c0_23 = arith.constant 0 : index
    %c0_24 = arith.constant 0 : index
    %47 = vector.load %arg7[%c0_22, %c0_23, %c0_24] : memref<1x16x24xf32, #tpu.memory_space<vmem>>, vector<1x16x24xf32>
    tpu.vector_store %arg7[%c0_22, %c0_23, %c0_24], %46 {strides = array<i32>} : memref<1x16x24xf32, #tpu.memory_space<vmem>>, vector<1x16x24xf32>,
    %c0_25 = arith.constant 0 : index
    %c1 = arith.constant 1 : index
    %c0_26 = arith.constant 0 : index
    %c0_27 = arith.constant 0 : index
    %48 = vector.load %arg1[%c0_25, %c1, %c0_26, %c0_27] : memref<1x2x16x32xf32, #tpu.memory_space<vmem>>, vector<1x1x16x32xf32>
    %49 = vector.shape_cast %48 : vector<1x1x16x32xf32> to vector<1x16x32xf32>
    %50 = vector.shape_cast %49 : vector<1x16x32xf32> to vector<16x32xf32>
    %cst_28 = arith.constant dense<0.000000e+00> : vector<16x24xf32>
    %51 = tpu.matmul %50, %0, %cst_28 {dimension_numbers = #tpu.dot_dimension_numbers<[1], [0], [0], [1], [0, 0, 1, 1], [], []>} : vector<16x32xf32>, vector<32x24xf32>, vector<16x24xf32> -> vector<16x24xf32>
    %52 = vector.broadcast %1 : vector<1x24xf32> to vector<16x24xf32>
    %53 = arith.addf %51, %52 : vector<16x24xf32>
    %54 = vector.shape_cast %53 : vector<16x24xf32> to vector<1x16x24xf32>
    %c1_29 = arith.constant 1 : index
    %c0_30 = arith.constant 0 : index
    %c0_31 = arith.constant 0 : index
    %55 = vector.load %arg4[%c1_29, %c0_30, %c0_31] : memref<2x16x24xf32, #tpu.memory_space<vmem>>, vector<1x16x24xf32>
    %56 = vector.shape_cast %55 : vector<1x16x24xf32> to vector<16x24xf32>
    %57 = vector.shape_cast %56 : vector<16x24xf32> to vector<1x16x24xf32>
    %58 = arith.mulf %54, %57 : vector<1x16x24xf32>
    %c0_32 = arith.constant 0 : index
    %c1_33 = arith.constant 1 : index
    %c0_34 = arith.constant 0 : index
    %c0_35 = arith.constant 0 : index
    %59 = vector.load %arg8[%c0_32, %c1_33, %c0_34, %c0_35] : memref<1x2x16x24xf32, #tpu.memory_space<vmem>>, vector<1x1x16x24xf32>
    %60 = vector.shape_cast %59 : vector<1x1x16x24xf32> to vector<1x16x24xf32>
    %61 = vector.shape_cast %58 : vector<1x16x24xf32> to vector<1x1x16x24xf32>
    tpu.vector_store %arg8[%c0_32, %c1_33, %c0_34, %c0_35], %61 {strides = array<i32>} : memref<1x2x16x24xf32, #tpu.memory_space<vmem>>, vector<1x1x16x24xf32>,
    %cst_36 = arith.constant dense<0xFF800000> : vector<1x24xf32>
    %62 = vector.multi_reduction <maximumf>, %58, %cst_36 [1] : vector<1x16x24xf32> to vector<1x24xf32>
    %63 = vector.shape_cast %62 : vector<1x24xf32> to vector<1x1x24xf32>
    %64 = vector.broadcast %63 : vector<1x1x24xf32> to vector<1x16x24xf32>
    %65 = arith.subf %58, %64 : vector<1x16x24xf32>
    %66 = math.exp %65 : vector<1x16x24xf32>
    %cst_37 = arith.constant dense<0.000000e+00> : vector<1x24xf32>
    %67 = vector.multi_reduction <add>, %66, %cst_37 [1] : vector<1x16x24xf32> to vector<1x24xf32>
    %68 = vector.shape_cast %67 : vector<1x24xf32> to vector<1x1x24xf32>
    %69 = tpu.reciprocal %68 : vector<1x1x24xf32> -> vector<1x1x24xf32>
    %70 = vector.broadcast %69 : vector<1x1x24xf32> to vector<1x16x24xf32>
    %71 = arith.mulf %66, %70 : vector<1x16x24xf32>
    %72 = tpu.iota {dimensions = array<i32: 1>} : vector<1x16x24xi32>
    %73 = vector.broadcast %63 : vector<1x1x24xf32> to vector<1x16x24xf32>
    %74 = arith.cmpf oeq, %58, %73 : vector<1x16x24xf32>
    %c16_i32_38 = arith.constant 16 : i32
    %75 = vector.broadcast %c16_i32_38 : i32 to vector<1x16x24xi32>
    %76 = arith.select %74, %72, %75 : vector<1x16x24xi1>, vector<1x16x24xi32>
    %cst_39 = arith.constant dense<2147483647> : vector<1x24xi32>
    %77 = vector.multi_reduction <minsi>, %76, %cst_39 [1] : vector<1x16x24xi32> to vector<1x24xi32>
    %78 = vector.shape_cast %77 : vector<1x24xi32> to vector<1x1x24xi32>
    %79 = vector.broadcast %78 : vector<1x1x24xi32> to vector<1x16x24xi32>
    %80 = arith.cmpi eq, %72, %79 : vector<1x16x24xi32>
    %81 = arith.extui %80 : vector<1x16x24xi1> to vector<1x16x24xi32>
    %82 = arith.sitofp %81 : vector<1x16x24xi32> to vector<1x16x24xf32>
    %83 = vector.shape_cast %82 : vector<1x16x24xf32> to vector<16x24xf32>
    %cst_40 = arith.constant dense<0.000000e+00> : vector<16x24xf32>
    %84 = tpu.matmul %83, %2, %cst_40 {dimension_numbers = #tpu.dot_dimension_numbers<[1], [0], [0], [1], [0, 0, 1, 1], [], []>} : vector<16x24xf32>, vector<24x24xf32>, vector<16x24xf32> -> vector<16x24xf32>
    %85 = vector.shape_cast %84 : vector<16x24xf32> to vector<1x16x24xf32>
    %86 = vector.shape_cast %3 : vector<1x24xf32> to vector<1x1x24xf32>
    %87 = vector.broadcast %86 : vector<1x1x24xf32> to vector<1x16x24xf32>
    %88 = arith.addf %85, %87 : vector<1x16x24xf32>
    %89 = arith.mulf %71, %54 : vector<1x16x24xf32>
    %90 = arith.mulf %89, %88 : vector<1x16x24xf32>
    %c0_41 = arith.constant 0 : index
    %c0_42 = arith.constant 0 : index
    %c0_43 = arith.constant 0 : index
    %91 = vector.load %arg7[%c0_41, %c0_42, %c0_43] : memref<1x16x24xf32, #tpu.memory_space<vmem>>, vector<1x16x24xf32>
    %92 = arith.addf %91, %90 : vector<1x16x24xf32>
    %c0_44 = arith.constant 0 : index
    %c0_45 = arith.constant 0 : index
    %c0_46 = arith.constant 0 : index
    %93 = vector.load %arg7[%c0_44, %c0_45, %c0_46] : memref<1x16x24xf32, #tpu.memory_space<vmem>>, vector<1x16x24xf32>
    tpu.vector_store %arg7[%c0_44, %c0_45, %c0_46], %92 {strides = array<i32>} : memref<1x16x24xf32, #tpu.memory_space<vmem>>, vector<1x16x24xf32>,
    return
  }
  func.func @transform_0(%arg0: i32) -> (i32, i32, i32, i32) {
    %c0_i32 = arith.constant 0 : i32
    %c0_i32_0 = arith.constant 0 : i32
    %c0_i32_1 = arith.constant 0 : i32
    %c0_i32_2 = arith.constant 0 : i32
    return %arg0, %c0_i32, %c0_i32_0, %c0_i32_1 : i32, i32, i32, i32
  }
  func.func @transform_1(%arg0: i32) -> (i32, i32) {
    %c0_i32 = arith.constant 0 : i32
    %c0_i32_0 = arith.constant 0 : i32
    %c0_i32_1 = arith.constant 0 : i32
    return %c0_i32, %c0_i32_0 : i32, i32
  }
  func.func @transform_2(%arg0: i32) -> (i32, i32) {
    %c0_i32 = arith.constant 0 : i32
    %c0_i32_0 = arith.constant 0 : i32
    %c0_i32_1 = arith.constant 0 : i32
    return %c0_i32, %c0_i32_0 : i32, i32
  }
  func.func @transform_3(%arg0: i32) -> (i32, i32, i32) {
    %c0_i32 = arith.constant 0 : i32
    %c0_i32_0 = arith.constant 0 : i32
    %c0_i32_1 = arith.constant 0 : i32
    %c0_i32_2 = arith.constant 0 : i32
    return %c0_i32, %c0_i32_0, %c0_i32_1 : i32, i32, i32
  }
  func.func @transform_4(%arg0: i32) -> (i32, i32) {
    %c0_i32 = arith.constant 0 : i32
    %c0_i32_0 = arith.constant 0 : i32
    %c0_i32_1 = arith.constant 0 : i32
    return %c0_i32, %c0_i32_0 : i32, i32
  }
  func.func @transform_5(%arg0: i32) -> (i32, i32) {
    %c0_i32 = arith.constant 0 : i32
    %c0_i32_0 = arith.constant 0 : i32
    %c0_i32_1 = arith.constant 0 : i32
    return %c0_i32, %c0_i32_0 : i32, i32
  }
  func.func @transform_6(%arg0: i32) -> (i32, i32, i32) {
    %c0_i32 = arith.constant 0 : i32
    %c0_i32_0 = arith.constant 0 : i32
    %c0_i32_1 = arith.constant 0 : i32
    return %arg0, %c0_i32, %c0_i32_0 : i32, i32, i32
  }
  func.func @transform_7(%arg0: i32) -> (i32, i32, i32, i32) {
    %c0_i32 = arith.constant 0 : i32
    %c0_i32_0 = arith.constant 0 : i32
    %c0_i32_1 = arith.constant 0 : i32
    %c0_i32_2 = arith.constant 0 : i32
    return %arg0, %c0_i32, %c0_i32_0, %c0_i32_1 : i32, i32, i32, i32
  }
}

</mosaic_0001>

<bundles_post_ra>
// kernel: tpu_custom_call.1
= control target key start
LH: loop header
LB: loop body
LE: loop exit
PB: predicated region body
PF: predicated region fallthrough
CT: control target
= control target key end

     0   :  { %13 = vsyncpa [#allocation3], 0  ;;  %s1653_s0 = inlined_call_operand.hbm [shape: f32[2,2,16,32], index: 0, kind: input, shape index: {}]   ;;  %s1654_s1 = inlined_call_operand.vmem [shape: f32[32,24], index: 1, kind: input, shape index: {}]   ;;  %s1655_s2 = inlined_call_operand.vmem [shape: f32[1,24], index: 2, kind: input, shape index: {}]   ;;  %s1656_s3 = inlined_call_operand.vmem [shape: f32[2,16,24], index: 3, kind: input, shape index: {}]   ;;  %s1657_s4 = inlined_call_operand.vmem [shape: f32[24,24], index: 4, kind: input, shape index: {}]   ;;  %s1658_s5 = inlined_call_operand.vmem [shape: f32[1,24], index: 5, kind: input, shape index: {}]   ;;  %s1659_s6 = inlined_call_operand.hbm [shape: f32[2,16,24], index: 6, kind: output, shape index: {0}]   ;;  %s1660_s7 = inlined_call_operand.hbm [shape: f32[2,2,16,24], index: 7, kind: output, shape index: {1}]  }
   0x1   :  { %15 = vsyncpa [#allocation3 + $0x1], 0 }
   0x2   :  { %16 = vsyncpa [#allocation4], 0 }
   0x3   :  { %18 = vsyncpa [#allocation4 + $0x1], 0 }
   0x4   :  { %19 = vsyncpa [#allocation7], 0 }
   0x5   :  { %21 = vsyncpa [#allocation7 + $0x1], 0  ;;  %s1310_s24 = smov 0   ;;  %s1312_s25 = smov 0  }
   0x6   :  { %s1314_s26 = smov 0   ;;  %s1316_s27 = smov 0  }
   0x7 LB: > { %s1331_s28 = sadd.s32 4294967295, %s1260_s27   ;;  %s937_s29 = sadd.s32 4294967294, %s1260_s27   ;;  %s1260_s27 = sphi %s1316_s27, %s1673_s27   ;;  %s1256_s26 = sphi %s1314_s26, %s1672_s26   ;;  %s1252_s25 = sphi %s1312_s25, %s1671_s25   ;;  %s1248_s24 = sphi %s1310_s24, %s1670_s24  }
   0x8   : > { %s1335_s30 = sadd.s32 1, %s1260_s27   ;;  %s34_s8 = sadd.s32 1, %s1256_s26 }
   0x9   : > { %s31_s9 = ssub.s32 %s1260_s27, %s1335_s30  ;;  %p41_p0 = scmp.ne.s32.totalorder %s1256_s26, %s1252_s25 }
   0xa   : > { %p32_p1 = scmp.eq.s32.totalorder %s31_s9, 0  ;;  %p42_p2 = scmp.eq.s32.totalorder %s1260_s27, 0 }
   0xb   : > { %p47_p3 = scmp.ne.s32.totalorder %s1252_s25, %s1248_s24  ;;  %p48_p4 = scmp.eq.s32.totalorder %s1331_s28, 0 }
   0xc   : > { %s1347_s10 = scalar_select %p32_p1, %s1256_s26, %s34_s8  }
   0xd   : > { %p1349_p5 = por %p42_p2, %p41_p0  ;;  %p1353_p6 = por %p48_p4, %p47_p3 }
   0xe   : > { %p176_p7 = scmp.eq.s32.totalorder %s1331_s28, 1  ;;  %p182_p8 = scmp.eq.s32.totalorder %s937_s29, 1 }
   0xf   : > { %p1081_p10 = scmp.lt.s32.totalorder %s1260_s27, 2  ;;  %s243_s15 = sand.u32 1, %s1256_s26  }
  0x10   : > { %p1360_p11 = por %p176_p7, %p41_p0  ;;  %p1364_p12 = por %p182_p8, %p47_p3 }
  0x11   : > { %s975_s16 = sshll.u32 %s1260_s27, 9  ;;  %s940_s17 = sshll.u32 %s243_s15, 5 }
  0x12   : > { %s1664_s13 = scalar_select %p1360_p11, 1, 0 }
  0x13   : > { %s1665_s14 = scalar_select %p1364_p12, 1, 0 }
  0x14   : > { %s1373_s20 = scalar_lea.hbm %s1653_s0, %s975_s16  ;;  %s247_s21 = scalar_lea.vmem [#allocation2], %s940_s17 }
  0x15   : > { %s254_s22 = sshll.u32 %s247_s21, 4  ;;  %p1377_p13 = pnand %p1081_p10, %p1349_p5  ;;  %s1381_s22 = int_to_ptr.vmem [resolvable:$true] %s254_s22 }
  0x16   : > { %s1383_s29 = scalar_lea.sflag [#allocation3], %s243_s15  ;;  %s1132_s8 = scalar_lea.hbm %s1373_s20, 512 }
  0x17   : > { %p1133_p0 = scmp.ne.s32.totalorder %s1373_s20, %s1132_s8  ;;  %p1134_p1 = pneg %p1377_p13 }
  0x18   : > { %s1137_s16 = scalar_lea.hbm %s1653_s0, 1024  ;;  %p1138_p4 = scmp.lt.u32.totalorder %s1373_s20, %s1653_s0 }
  0x19   : > { %p1135_p2 = pnand %p1134_p1, %p1133_p0  ;;  %p1139_p5 = scmp.lt.u32.totalorder %s1137_s16, %s1132_s8 }
  0x1a   : > { %p1141_p8 = scmp.lt.u32.totalorder %s1132_s8, %s1373_s20 }
  0x1b   : > { %p1136_p3 = pneg %p1135_p2  ;;  %p1140_p7 = por %p1139_p5, %p1138_p4 }
  0x1d   : > { %p1142_p10 = por %p1141_p8, %p1140_p7 }
  0x1f   : > { %p1143_p9 = pnand %p1142_p10, %p1136_p3 }
  0x21   : > { %1146 = shalt.err (!%p1143_p9)
}
  0x22   : > { %s1147_s15 = scalar_lea.vmem %s1381_s22, 512  ;;  %s1262_s19 = smov [#allocation2]  }
  0x23   : > { %p1148_p0 = scmp.ne.s32.totalorder %s1381_s22, %s1147_s15  ;;  %s1152_s21 = sshll.u32 %s1262_s19, 4  ;;  %s1153_s21 = int_to_ptr.vmem [resolvable:$false] %s1152_s21 }
  0x24   : > { %s1154_s9 = scalar_lea.vmem %s1153_s21, 1024  ;;  %p1155_p11 = scmp.lt.s32.totalorder %s1381_s22, %s1153_s21 }
  0x25   : > { %p1150_p2 = pnand %p1148_p0, %p1134_p1  ;;  %p1156_p4 = scmp.lt.s32.totalorder %s1154_s9, %s1147_s15 }
  0x27   : > { %p1151_p12 = pneg %p1150_p2  ;;  %p1157_p5 = por %p1156_p4, %p1155_p11 }
  0x29   : > { %p1158_p7 = pnand %p1157_p5, %p1151_p12 }
  0x2b   : > { %1161 = shalt.err (!%p1158_p7)
}
  0x2c   : > { %s1263_s8 = smov 128   ;;  %s1264_s11 = smov 8  }
  0x2d   : > { %1073 = dma.hbm_to_vmem [thread:$0]  (!%p1377_p13), %s1373_s20, 512, %s1381_s22, %s1383_s29, %s1263_s8, %s1263_s8, %s1264_s11  }
  0x2e   : > { %p943_p9 = scmp.ge.s32.totalorder %s1260_s27, 1  ;;  %p262_p1 = scmp.lt.s32.totalorder %s1260_s27, 3 }
  0x30   : > { %p263_p3 = pnand %p943_p9, %p262_p1 }
  0x31   : > { %s1414_s16 = sand.u32 (!%p263_p3), 1, %s1252_s25  }
  0x32   : > { %266 = sbr.rel (%p263_p3) target bundleno = 816 (0x330), region = 44  ;;  %s944_s17 = sshll.u32 (!%p263_p3), %s1414_s16, 5 }
  0x33   : > { %s269_s18 = scalar_lea.sflag (!%p263_p3), [#allocation3], %s1414_s16  ;;  %s1420_s15 = scalar_lea.vmem (!%p263_p3), [#allocation2], %s944_s17 }
  0x39   : > { %1235 = dma.done.wait (%p1353_p6), %s269_s18, 512  }
  0x3a   : > { %1237 = vsyncadd (%p1353_p6), %s269_s18, 4294966784  ;;  %vm325_vm0 = vcmask 261120   ;;  %v308_v0 = vld [vmem:[%s1654_s1] sm:$0xff]  ;;  %v309_v1 = vld [vmem:[%s1654_s1 + $0x8] sm:$0xff]  ;;  %vm411_vm1 = vcmask 195584   ;;  %s1481_s11 = scalar_lea.vmem [#allocation6], %s944_s17  ;;  %v441_v25 = vlaneseq }
  0x3b   : > { %v310_v2 = vld [vmem:[%s1654_s1 + $0x10] sm:$0xff]  ;;  %v1435_v3 = vpack.c.bf16 %v309_v1, %v308_v0  ;;  %v311_v4 = vld [vmem:[%s1654_s1 + $0x18] sm:$0xff]  ;;  %v317_v5 = vld [vmem:[%s1420_s15] sm:$0xff]  ;;  %v1265_v54 = vmov 0.0   ;;  %s945_s20 = sshll.u32 %s1414_s16, 4  ;;  %s832_s21 = sshll.u32 %s1481_s11, 4  ;;  %s1556_s21 = int_to_ptr.vmem [resolvable:$true] %s832_s21 }
  0x3c   : > { %v1441_v6 = vpack.c.bf16 %v311_v4, %v310_v2  ;;  %1008 = vmatprep.mubr.msk.f32.mxu0 %vm325_vm0, %v317_v5  ;;  %v318_v7 = vld [vmem:[%s1420_s15 + $0x8] sm:$0xff]  ;;  %v313_v8 = vld [vmem:[%s1657_s4] sm:$0xff]  ;;  %v315_v11 = vld [vmem:[%s1657_s4 + $0x10] sm:$0xff]  ;;  %v1489_v28 = vshrl.u32 %v441_v25, 7  ;;  %s977_s9 = sshll.u32 %s1331_s28, 9  ;;  %s803_s18 = scalar_lea.sflag [#allocation7], %s1414_s16 }
  0x3d   : > { %1041 = vmatprep.subr.bf16.mxu0 %v1435_v3  ;;  %v314_v9 = vld [vmem:[%s1657_s4 + $0x8] sm:$0xff]  ;;  %v1463_v12 = vld [vmem:[%s1655_s2] ss:$0 sm:$0xff]  ;;  %v955_v57 = vld [vmem:[%s1420_s15 + $0x10] sm:$0xff]  ;;  %s1562_s17 = scalar_lea.hbm %s1660_s7, %s977_s9  ;;  %p1667_p11 = scmp.ne.s32.totalorder %s1664_s13, 0 }
  0x3e   : > { %1043 = vmatpush3.bf16.msra.mxu0 %v1435_v3  ;;  %v1048_v10 = vpack.c.bf16 %v314_v9, %v313_v8  ;;  %v408_v14 = vld [vmem:[%s1656_s3 + $0x8] sm:$0xff]  ;;  %v407_v17 = vld [vmem:[%s1656_s3] sm:$0xff]  ;;  %v1492_v31 = vadd.s32 8, %v1489_v28  ;;  %v956_v61 = vld [vmem:[%s1420_s15 + $0x18] sm:$0xff]  ;;  %s1523_s15 = scalar_lea.vmem [#allocation5], %s945_s20  ;;  %s1162_s20 = scalar_lea.vmem %s1556_s21, 512 }
  0x3f   : > { %1045 = vmatprep.subr.bf16.mxu0 %v1441_v6  ;;  %v1518_v5 = vld [vmem:[%s1658_s5] ss:$0 sm:$0xff]  ;;  %p1163_p6 = scmp.ne.s32.totalorder %s1556_s21, %s1162_s20  ;;  %s1266_s22 = smov [#allocation6]  }
  0x40   : > { %1049 = vmatprep.subr.bf16.mxu1 %v1048_v10  ;;  %s1166_s23 = sshll.u32 %s1266_s22, 4  ;;  %s1167_s23 = int_to_ptr.vmem [resolvable:$false] %s1166_s23 }
  0x41   : > { %1051 = vmatpush3.bf16.msra.mxu1 %v1048_v10  ;;  %p1164_p12 = pnand %p1163_p6, %p1667_p11  ;;  %p1169_p8 = scmp.lt.s32.totalorder %s1556_s21, %s1167_s23 }
  0x42   : > { %1047 = vmatpush3.bf16.msra.mxu0 %v1441_v6  ;;  %1015 = vmatprep.subr.mxu1 %v315_v11 }
  0x43   : > { %1061 = vmatprep.subr.bf16.mxu0 %v1048_v10  ;;  %p1165_p13 = pneg %p1164_p12 }
  0x45   : > { %1009 = vmatmul.mubr.msk.f32.vlgmr.msra.gmra.mrb[0].mxu0 %vm325_vm0, %v318_v7  ;;  %1016 = vmatpush3.msra.mxu1 %v315_v11 }
  0x46   : > { %1063 = vmatpush3.bf16.msra.mxu0 %v1048_v10  ;;  %1053 = vmatprep.subr.bf16.mxu1 %v1435_v3 }
  0x47   : > { %1035 = vmatprep.subr.mxu0 %v315_v11 }
  0x4a   : > { %1036 = vmatpush3.msra.mxu0 %v315_v11 }
 0x118   : > { %v1010_v13 = vpop.f32.mrb[0].mxu0 }
 0x119   : > { %v1469_v15 = vadd.f32 %v1010_v13, %v1463_v12  ;;  %v398_v16 = vpop.f32.mrb[1].mxu0 }
 0x11a   : > { %v1475_v18 = vadd.f32 %v1463_v12, %v398_v16 }
 0x11b   : > { %v410_v19 = vmul.f32 %v408_v14, %v1469_v15  ;;  %v960_v14 = vld [vmem:[%s1656_s3 + $0x18] sm:$0xff] }
 0x11c   : > { %v409_v20 = vmul.f32 %v407_v17, %v1475_v18  ;;  %v959_v17 = vld [vmem:[%s1656_s3 + $0x10] sm:$0xff] }
 0x11d   : > { %413 = vst.msk [vmem:[%s1481_s11 + $0x8] sm:$0xff] %vm411_vm1, %v410_v19  ;;  %v415_v21 = vsel %vm411_vm1, %v410_v19, -inf }
 0x11e   : > { %412 = vst.msk [vmem:[%s1481_s11] sm:$0xff] %vm411_vm1, %v409_v20  ;;  %v414_v22 = vsel %vm411_vm1, %v409_v20, -inf }
 0x11f   : > { %v416_v23 = vmax.f32 %v414_v22, %v415_v21 }
 0x121   : > { %v417_v24 = vrot.slane %v416_v23, 4 }
 0x123   : > { %v418_v26 = vmax.f32 %v416_v23, %v417_v24 }
 0x125   : > { %v419_v27 = vrot.slane %v418_v26, 2 }
 0x127   : > { %v420_v29 = vmax.f32 %v418_v26, %v419_v27 }
 0x129   : > { %v421_v30 = vrot.slane %v420_v29, 1 }
 0x12b   : > { %v422_v32 = vmax.f32 %v420_v29, %v421_v30 }
 0x12d   : > { %v423_v33 = vsub.f32 %v409_v20, %v422_v32  ;;  %v424_v34 = vsub.f32 %v410_v19, %v422_v32  ;;  %vm444_vm2 = vcmp.eq.f32.partialorder %v409_v20, %v422_v32  ;;  %vm445_vm3 = vcmp.eq.f32.partialorder %v410_v19, %v422_v32 }
 0x12e   : > { %v446_v35 = vsel %vm444_vm2, %v1489_v28, 16  ;;  %v447_v36 = vsel %vm445_vm3, %v1492_v31, 16 }
 0x12f   : > { %v425_v37 = vmul.f32 1.442695, %v423_v33  ;;  %v427_v38 = vmul.f32 1.442695, %v424_v34  ;;  %v448_v39 = vsel %vm411_vm1, %v446_v35, 2147483647 }
 0x130   : > { %v449_v40 = vsel %vm411_vm1, %v447_v36, 2147483647 }
 0x131   : > { %1120 = vpow2.f32 %v425_v37  ;;  %vm450_vm4 = vcmp.lt.s32.totalorder %v448_v39, %v449_v40 }
 0x132   : > { %1122 = vpow2.f32 %v427_v38  ;;  %v451_v41 = vsel %vm450_vm4, %v448_v39, %v449_v40 }
 0x133   : > { %v452_v42 = vrot.slane %v451_v41, 4 }
 0x135   : > { %vm453_vm5 = vcmp.lt.s32.totalorder %v451_v41, %v452_v42 }
 0x136   : > { %v454_v43 = vsel %vm453_vm5, %v451_v41, %v452_v42 }
 0x137   : > { %v455_v44 = vrot.slane %v454_v43, 2 }
 0x139   : > { %vm456_vm6 = vcmp.lt.s32.totalorder %v454_v43, %v455_v44 }
 0x13a   : > { %v457_v45 = vsel %vm456_vm6, %v454_v43, %v455_v44 }
 0x13b   : > { %v1121_v46 = vpop.eup %1120  ;;  %v458_v47 = vrot.slane %v457_v45, 1 }
 0x13c   : > { %v1123_v48 = vpop.eup %1122  ;;  %v429_v49 = vsel %vm411_vm1, %v1121_v46, 0.0 }
 0x13d   : > { %v430_v50 = vsel %vm411_vm1, %v1123_v48, 0.0  ;;  %vm459_vm7 = vcmp.lt.s32.totalorder %v457_v45, %v458_v47 }
 0x13e   : > { %v431_v51 = vadd.f32 %v430_v50, %v429_v49  ;;  %v460_v52 = vsel %vm459_vm7, %v457_v45, %v458_v47 }
 0x13f   : > { %vm461_vm8 = vcmp.eq.s32.totalorder %v1489_v28, %v460_v52  ;;  %vm462_vm9 = vcmp.eq.s32.totalorder %v1492_v31, %v460_v52 }
 0x140   : > { %v432_v53 = vrot.slane %v431_v51, 4  ;;  %v950_v55 = vsel %vm461_vm8, 1.0, %v1265_v54  ;;  %v951_v56 = vsel %vm462_vm9, 1.0, %v1265_v54 }
 0x141   : > { %1017 = vmatprep.mubr.msk.f32.mxu1 %vm411_vm1, %v950_v55 }
 0x142   : > { %v433_v58 = vadd.f32 %v432_v53, %v431_v51  ;;  %1018 = vmatmul.mubr.msk.f32.vlgmr.msra.gmra.mrb[0].mxu1 %vm411_vm1, %v951_v56 }
 0x143   : > { %1055 = vmatpush3.bf16.msra.mxu1 %v1435_v3  ;;  %1028 = vmatprep.mubr.msk.f32.mxu1 %vm325_vm0, %v955_v57 }
 0x144   : > { %v434_v59 = vrot.slane %v433_v58, 2  ;;  %1057 = vmatprep.subr.bf16.mxu1 %v1441_v6 }
 0x146   : > { %v435_v60 = vadd.f32 %v434_v59, %v433_v58 }
 0x147   : > { %1059 = vmatpush3.bf16.msra.mxu1 %v1441_v6 }
 0x148   : > { %v436_v62 = vrot.slane %v435_v60, 1 }
 0x14a   : > { %v437_v63 = vadd.f32 %v436_v62, %v435_v60  ;;  %1029 = vmatmul.mubr.msk.f32.vlgmr.msra.gmra.mrb[2].mxu1 %vm325_vm0, %v956_v61 }
 0x14c   : > { %1124 = vrcp.f32 %v437_v63 }
 0x156   : > { %v1125_v0 = vpop.eup %1124 }
 0x157   : > { %v439_v1 = vmul.f32 %v1125_v0, %v1121_v46  ;;  %v440_v2 = vmul.f32 %v1125_v0, %v1123_v48 }
 0x159   : > { %v556_v3 = vmul.f32 %v439_v1, %v1475_v18  ;;  %v557_v4 = vmul.f32 %v440_v2, %v1469_v15 }
 0x215   : > { %v1019_v6 = vpop.f32.mrb[0].mxu1 }
 0x216   : > { %v555_v7 = vadd.f32 %v1019_v6, %v1518_v5  ;;  %v539_v8 = vpop.f32.mrb[1].mxu1 }
 0x217   : > { %v554_v9 = vadd.f32 %v1518_v5, %v539_v8 }
 0x218   : > { %v559_v10 = vmul.f32 %v557_v4, %v555_v7 }
 0x219   : > { %v558_v11 = vmul.f32 %v556_v3, %v554_v9 }
 0x21a   : > { %561 = vst.msk [vmem:[%s1523_s15 + $0x8] sm:$0xff] %vm411_vm1, %v559_v10 }
 0x21b   : > { %560 = vst.msk [vmem:[%s1523_s15] sm:$0xff] %vm411_vm1, %v558_v11 }
 0x21d   : > { %v1030_v13 = vpop.f32.mrb[2].mxu1 }
 0x21e   : > { %v643_v15 = vadd.f32 %v1030_v13, %v1463_v12  ;;  %v637_v16 = vpop.f32.mrb[3].mxu1 }
 0x21f   : > { %v638_v18 = vadd.f32 %v1463_v12, %v637_v16 }
 0x220   : > { %v650_v19 = vmul.f32 %v960_v14, %v643_v15 }
 0x221   : > { %v649_v20 = vmul.f32 %v959_v17, %v638_v18 }
 0x222   : > { %962 = vst.msk [vmem:[%s1481_s11 + $0x18] sm:$0xff] %vm411_vm1, %v650_v19  ;;  %v655_v21 = vsel %vm411_vm1, %v650_v19, -inf }
 0x223   : > { %961 = vst.msk [vmem:[%s1481_s11 + $0x10] sm:$0xff] %vm411_vm1, %v649_v20  ;;  %v654_v22 = vsel %vm411_vm1, %v649_v20, -inf  ;;  %s1168_s11 = scalar_lea.vmem %s1167_s23, 1024 }
 0x224   : > { %v656_v23 = vmax.f32 %v654_v22, %v655_v21  ;;  %p1170_p10 = scmp.lt.s32.totalorder %s1168_s11, %s1162_s20 }
 0x226   : > { %v657_v24 = vrot.slane %v656_v23, 4  ;;  %p1171_p0 = por %p1170_p10, %p1169_p8 }
 0x228   : > { %v658_v25 = vmax.f32 %v656_v23, %v657_v24  ;;  %p1172_p2 = pnand %p1171_p0, %p1165_p13 }
 0x22a   : > { %v659_v26 = vrot.slane %v658_v25, 2 }
 0x22c   : > { %v660_v27 = vmax.f32 %v658_v25, %v659_v26 }
 0x22e   : > { %v661_v29 = vrot.slane %v660_v27, 1 }
 0x230   : > { %v662_v30 = vmax.f32 %v660_v27, %v661_v29 }
 0x232   : > { %v663_v32 = vsub.f32 %v649_v20, %v662_v30  ;;  %v664_v33 = vsub.f32 %v650_v19, %v662_v30  ;;  %vm681_vm10 = vcmp.eq.f32.partialorder %v649_v20, %v662_v30  ;;  %vm682_vm11 = vcmp.eq.f32.partialorder %v650_v19, %v662_v30 }
 0x233   : > { %v683_v12 = vsel %vm681_vm10, %v1489_v28, 16  ;;  %v684_v34 = vsel %vm682_vm11, %v1492_v31, 16 }
 0x234   : > { %v665_v35 = vmul.f32 1.442695, %v663_v32  ;;  %v667_v36 = vmul.f32 1.442695, %v664_v33  ;;  %v685_v37 = vsel %vm411_vm1, %v683_v12, 2147483647 }
 0x235   : > { %v686_v38 = vsel %vm411_vm1, %v684_v34, 2147483647 }
 0x236   : > { %1126 = vpow2.f32 %v665_v35  ;;  %vm687_vm12 = vcmp.lt.s32.totalorder %v685_v37, %v686_v38 }
 0x237   : > { %1128 = vpow2.f32 %v667_v36  ;;  %v688_v39 = vsel %vm687_vm12, %v685_v37, %v686_v38 }
 0x238   : > { %v689_v40 = vrot.slane %v688_v39, 4 }
 0x23a   : > { %vm690_vm13 = vcmp.lt.s32.totalorder %v688_v39, %v689_v40 }
 0x23b   : > { %v691_v41 = vsel %vm690_vm13, %v688_v39, %v689_v40 }
 0x23c   : > { %v692_v42 = vrot.slane %v691_v41, 2 }
 0x23e   : > { %vm693_vm14 = vcmp.lt.s32.totalorder %v691_v41, %v692_v42 }
 0x23f   : > { %v694_v43 = vsel %vm693_vm14, %v691_v41, %v692_v42 }
 0x240   : > { %v1127_v44 = vpop.eup %1126  ;;  %v695_v45 = vrot.slane %v694_v43, 1 }
 0x241   : > { %v1129_v46 = vpop.eup %1128  ;;  %v669_v47 = vsel %vm411_vm1, %v1127_v44, 0.0 }
 0x242   : > { %v670_v48 = vsel %vm411_vm1, %v1129_v46, 0.0  ;;  %vm696_vm15 = vcmp.lt.s32.totalorder %v694_v43, %v695_v45 }
 0x243   : > { %v671_v49 = vadd.f32 %v670_v48, %v669_v47  ;;  %v697_v50 = vsel %vm696_vm15, %v694_v43, %v695_v45 }
 0x244   : > { %vm698_vm0 = vcmp.eq.s32.totalorder %v1489_v28, %v697_v50  ;;  %vm699_vm2 = vcmp.eq.s32.totalorder %v1492_v31, %v697_v50 }
 0x245   : > { %v672_v51 = vrot.slane %v671_v49, 4  ;;  %v963_v52 = vsel %vm698_vm0, 1.0, %v1265_v54  ;;  %v964_v53 = vsel %vm699_vm2, 1.0, %v1265_v54 }
 0x246   : > { %1037 = vmatprep.mubr.msk.f32.mxu0 %vm411_vm1, %v963_v52 }
 0x247   : > { %v673_v55 = vadd.f32 %v672_v51, %v671_v49  ;;  %1038 = vmatmul.mubr.msk.f32.vlgmr.msra.gmra.mrb[2].mxu0 %vm411_vm1, %v964_v53 }
 0x249   : > { %v674_v56 = vrot.slane %v673_v55, 2 }
 0x24b   : > { %v675_v57 = vadd.f32 %v674_v56, %v673_v55 }
 0x24d   : > { %v676_v58 = vrot.slane %v675_v57, 1 }
 0x24f   : > { %v677_v28 = vadd.f32 %v676_v58, %v675_v57 }
 0x251   : > { %1130 = vrcp.f32 %v677_v28 }
 0x25b   : > { %v1131_v31 = vpop.eup %1130 }
 0x25c   : > { %v679_v59 = vmul.f32 %v1131_v31, %v1127_v44  ;;  %v680_v60 = vmul.f32 %v1131_v31, %v1129_v46 }
 0x25e   : > { %v787_v61 = vmul.f32 %v679_v59, %v638_v18  ;;  %v788_v62 = vmul.f32 %v680_v60, %v643_v15 }
 0x25f   : > { %1175 = shalt.err (!%p1172_p2)
}
 0x260   : > { %s1176_s29 = scalar_lea.hbm %s1562_s17, 512  ;;  %s1180_s12 = scalar_lea.hbm %s1660_s7, 1024 }
 0x261   : > { %p1177_p4 = scmp.ne.s32.totalorder %s1562_s17, %s1176_s29  ;;  %p1181_p9 = scmp.lt.u32.totalorder %s1562_s17, %s1660_s7 }
 0x262   : > { %p1182_p1 = scmp.lt.u32.totalorder %s1180_s12, %s1176_s29  ;;  %p1184_p6 = scmp.lt.u32.totalorder %s1176_s29, %s1562_s17 }
 0x263   : > { %p1178_p5 = pnand %p1177_p4, %p1667_p11 }
 0x264   : > { %p1183_p3 = por %p1182_p1, %p1181_p9 }
 0x265   : > { %p1179_p7 = pneg %p1178_p5 }
 0x266   : > { %p1185_p12 = por %p1184_p6, %p1183_p3 }
 0x268   : > { %p1186_p13 = pnand %p1185_p12, %p1179_p7 }
 0x26a   : > { %1189 = shalt.err (!%p1186_p13)
}
 0x26b   : > { %s1267_s20 = smov 128   ;;  %s1268_s23 = smov 8   ;;  %v792_v3 = vld [vmem:[%s1523_s15 + $0x8] sm:$0xff]  ;;  %v791_v7 = vld [vmem:[%s1523_s15] sm:$0xff] }
 0x26c   : > { %1067 = dma.vmem_to_hbm [thread:$0]  (%p1667_p11), %s1556_s21, 512, %s1562_s17, %s803_s18, %s1267_s20, %s1267_s20, %s1268_s23  }
 0x26d   : > { %s976_s11 = sshll.u32 %s1331_s28, 8  ;;  %s816_s29 = sshll.u32 %s1523_s15, 4  ;;  %s1602_s29 = int_to_ptr.vmem [resolvable:$true] %s816_s29 }
 0x26e   : > { %s1600_s21 = scalar_lea.hbm %s1659_s6, %s976_s11  ;;  %s798_s28 = scalar_lea.sflag [#allocation4], %s1414_s16 }
 0x26f   : > { %s1190_s17 = scalar_lea.vmem %s1602_s29, 256  ;;  %s1269_s18 = smov [#allocation5]  }
 0x270   : > { %p1191_p8 = scmp.ne.s32.totalorder %s1602_s29, %s1190_s17  ;;  %s1194_s12 = sshll.u32 %s1269_s18, 4  ;;  %s1195_s12 = int_to_ptr.vmem [resolvable:$false] %s1194_s12 }
 0x271   : > { %s1196_s8 = scalar_lea.vmem %s1195_s12, 512  ;;  %p1197_p2 = scmp.lt.s32.totalorder %s1602_s29, %s1195_s12 }
 0x272   : > { %p1192_p10 = pnand %p1191_p8, %p1667_p11  ;;  %p1198_p4 = scmp.lt.s32.totalorder %s1196_s8, %s1190_s17 }
 0x274   : > { %p1193_p0 = pneg %p1192_p10  ;;  %p1199_p5 = por %p1198_p4, %p1197_p2 }
 0x276   : > { %p1200_p7 = pnand %p1199_p5, %p1193_p0 }
 0x31a   : > { %v1039_v54 = vpop.f32.mrb[2].mxu0 }
 0x31b   : > { %v786_v63 = vadd.f32 %v1039_v54, %v1518_v5  ;;  %v776_v0 = vpop.f32.mrb[3].mxu0 }
 0x31c   : > { %v785_v1 = vadd.f32 %v1518_v5, %v776_v0 }
 0x31d   : > { %v790_v2 = vmul.f32 %v788_v62, %v786_v63 }
 0x31e   : > { %v789_v4 = vmul.f32 %v787_v61, %v785_v1 }
 0x31f   : > { %v794_v6 = vadd.f32 %v792_v3, %v790_v2 }
 0x320   : > { %v793_v8 = vadd.f32 %v791_v7, %v789_v4 }
 0x321   : > { %796 = vst.msk [vmem:[%s1523_s15 + $0x8] sm:$0xff] %vm411_vm1, %v794_v6 }
 0x322   : > { %795 = vst.msk [vmem:[%s1523_s15] sm:$0xff] %vm411_vm1, %v793_v8 }
 0x323   : > { %1203 = shalt.err (!%p1200_p7)
}
 0x324   : > { %s1204_s15 = scalar_lea.hbm %s1600_s21, 256  ;;  %s1208_s19 = scalar_lea.hbm %s1659_s6, 512 }
 0x325   : > { %p1205_p9 = scmp.ne.s32.totalorder %s1600_s21, %s1204_s15  ;;  %p1209_p6 = scmp.lt.u32.totalorder %s1600_s21, %s1659_s6 }
 0x326   : > { %p1210_p12 = scmp.lt.u32.totalorder %s1208_s19, %s1204_s15  ;;  %p1212_p8 = scmp.lt.u32.totalorder %s1204_s15, %s1600_s21 }
 0x327   : > { %p1206_p1 = pnand %p1205_p9, %p1667_p11 }
 0x328   : > { %p1211_p13 = por %p1210_p12, %p1209_p6 }
 0x329   : > { %p1207_p3 = pneg %p1206_p1 }
 0x32a   : > { %p1213_p10 = por %p1212_p8, %p1211_p13 }
 0x32c   : > { %p1214_p0 = pnand %p1213_p10, %p1207_p3 }
 0x32e   : > { %1217 = shalt.err (!%p1214_p0)
}
 0x32f   : > { %1066 = dma.vmem_to_hbm [thread:$0]  (%p1667_p11), %s1602_s29, 256, %s1600_s21, %s798_s28, %s1267_s20, %s1267_s20, %s1268_s23  }
 0x330 PF: > { %s847_s17 = sand.u32 1, %s1248_s24   ;;  %p1668_p2 = scmp.ne.s32.totalorder %s1665_s14, 0 }
 0x331   : > { %p1669_p4 = scmp.ge.s32.totalorder %s1260_s27, 2  ;;  %s848_s12 = scalar_lea.sflag [#allocation4], %s847_s17 }
 0x333   : > { %p1075_p5 = pnand %p1669_p4, %p1668_p2 }
 0x335   : > { %1239 = dma.done.wait (!%p1075_p5), %s848_s12, 256  }
 0x336   : > { %1241 = vsyncadd (!%p1075_p5), %s848_s12, 4294967040  ;;  %s857_s13 = scalar_lea.sflag [#allocation7], %s847_s17 }
 0x337   : > { %1243 = dma.done.wait (!%p1075_p5), %s857_s13, 512  }
 0x338   : > { %1245 = vsyncadd (!%p1075_p5), %s857_s13, 4294966784  ;;  %p24_p11 = scmp.ge.s32.totalorder %s1335_s30, 4   ;;  %s1670_s24 = smov %s1252_s25 }
 0x339   : > { %s1671_s25 = smov %s1256_s26  ;;  %s1672_s26 = smov %s1347_s10 }
 0x33a   : > { %s1673_s27 = smov %s1335_s30  ;;  %26 = sbr.rel (!%p24_p11) target bundleno = 7 (0x7), region = 109 }
 0x341   :  { %862 = vsyncpa [#allocation3], 1 }
 0x342   :  { %864 = vsyncpa [#allocation3 + $0x1], 1 }
 0x343   :  { %865 = vsyncpa [#allocation4], 1 }
 0x344   :  { %867 = vsyncpa [#allocation4 + $0x1], 1 }
 0x345   :  { %868 = vsyncpa [#allocation7], 1 }
 0x346   :  { %870 = vsyncpa [#allocation7 + $0x1], 1 }

</bundles_post_ra>
